<compile_context>
chip_gen: v6e
topology: v6e:2x2x1
jax: 0.10.0
libtpu: 0.0.40
codegen_flags: <defaults>
</compile_context>

<pallas_src>
import functools

import jax
import jax.numpy as jnp
from jax.experimental import pallas as pl
from jax.experimental.pallas import tpu as pltpu


_TILE_IO_TARGET = 4 << 20  # per-block (in + out) bytes; HBM BW knee is ~1 MiB


def _rmsnorm_kernel(x_ref, w_ref, o_ref, *, eps, inv_h):
    # x_ref: (TM, Hp) row tile; w_ref: (1, Hp) weight (VMEM-resident); o_ref: (TM, Hp).
    x = x_ref[...].astype(jnp.float32)
    w = w_ref[...].astype(jnp.float32)                    # broadcasts over rows
    # sum/true_H (not jnp.mean over the padded width) so zero-padding is exact.
    ms = jnp.sum(x * x, axis=-1, keepdims=True) * inv_h   # (TM, 1)
    inv = jax.lax.rsqrt(ms + eps)                         # EUP slot; free at HBM roofline
    o_ref[...] = (x * inv * w).astype(o_ref.dtype)


def _round_up(x, m):
    return ((x + m - 1) // m) * m


def _sublane(itemsize):
    # Rows per vreg sublane tile: f32 -> 8, bf16/f16 -> 16, int8/fp8 -> 32.
    return max(8, 32 // max(int(itemsize), 1))


def _num_tensorcores():
    # v4 / v5p / v7x expose 2 TensorCores per chip (megacore); v5e / v6e have 1.
    try:
        kind = jax.devices()[0].device_kind.lower()
    except Exception:
        return 1
    if any(t in kind for t in ("v5 lite", "v5e", "v6 lite", "v6e", "v2", "v3")):
        return 1
    if any(t in kind for t in ("v4", "v5p", "v7", "7x", "tpu7")):
        return 2
    return 1


def _vmem_capacity_bytes():
    try:
        return int(pltpu.get_tpu_info().vmem_capacity_bytes)
    except Exception:
        return 64 << 20  # conservative fallback (v7x per-TC VMEM)


def _pick_block_rows(R, Hp, itemsize, n_tc):
    """Row tile capped at ~_TILE_IO_TARGET of in+out bytes, rounded to the dtype's
    sublane packing; on 2-TC chips force an even step count >= 2 for balance."""
    sub = _sublane(itemsize)
    io_per_row = Hp * 2 * itemsize                                   # in + out
    cap = max(sub, (_TILE_IO_TARGET // max(io_per_row, 1)) // sub * sub)
    all_rows = _round_up(R, sub)
    block_rows = min(cap, all_rows)                                  # fewest big blocks
    if n_tc >= 2:
        steps = pl.cdiv(R, block_rows)
        desired = max(2, _round_up(steps, 2))                        # even, >= 2 steps
        block_rows = min(cap, max(sub, _round_up(pl.cdiv(R, desired), sub)))
    return block_rows


def rms_norm(x, weight, *, eps=1e-6, block_rows=None):
    """RMSNorm over the last axis of x with per-feature scale `weight`."""
    orig_shape = x.shape
    H = orig_shape[-1]
    assert weight.shape == (H,)

    x2d = x.reshape(-1, H)
    R = x2d.shape[0]

    # Lane-dense width: pad H to a multiple of 128 (zero pad; mean uses true H).
    Hp = _round_up(H, 128)
    if Hp != H:
        x2d = jnp.pad(x2d, ((0, 0), (0, Hp - H)))
        w2d = jnp.pad(weight, (0, Hp - H)).reshape(1, Hp)
    else:
        w2d = weight.reshape(1, Hp)

    itemsize = x.dtype.itemsize
    n_tc = _num_tensorcores()
    if block_rows is None:
        block_rows = _pick_block_rows(R, Hp, itemsize, n_tc)

    grid = (pl.cdiv(R, block_rows),)  # ragged last block; Pallas masks it

    # VMEM budget: double-buffered in/out tiles + single-buffered weight + the
    # f32 internal shadow of sub-32-bit input tiles, with ~30% headroom.  Do NOT
    # reserve most of physical VMEM — this kernel never benefits from it.
    tile_in = block_rows * Hp * itemsize
    tile_out = block_rows * Hp * x.dtype.itemsize
    f32_shadow = block_rows * Hp * 4 if itemsize < 4 else 0
    needed = 2 * tile_in + 2 * tile_out + f32_shadow + Hp * w2d.dtype.itemsize
    vmem_limit = min(_vmem_capacity_bytes(),
                     max(4 << 20, int(needed * 1.3) + (1 << 20)))

    kernel = functools.partial(_rmsnorm_kernel, eps=eps, inv_h=1.0 / H)

    def _call(w_spec):
        return pl.pallas_call(
            kernel,
            out_shape=jax.ShapeDtypeStruct((R, Hp), x.dtype),
            grid_spec=pltpu.PrefetchScalarGridSpec(
                num_scalar_prefetch=0,
                grid=grid,
                in_specs=[
                    pl.BlockSpec((block_rows, Hp), lambda i: (i, 0)),
                    w_spec,
                ],
                out_specs=pl.BlockSpec((block_rows, Hp), lambda i: (i, 0)),
            ),
            # If profiling shows only one TC busy on 2-TC parts, switch this
            # axis to pltpu.CORE_PARALLEL.
            compiler_params=pltpu.CompilerParams(
                dimension_semantics=("parallel",),
                vmem_limit_bytes=vmem_limit,
            ),
        )(x2d, w2d)

    try:
        # Constant block index -> weight is DMA'd once; single-buffer it.
        out = _call(pl.BlockSpec((1, Hp), lambda i: (0, 0),
                                 pipeline_mode=pl.Buffered(1)))
    except Exception:
        # Fallback for jax versions where single-buffering this spec is rejected.
        out = _call(pl.BlockSpec((1, Hp), lambda i: (0, 0)))

    if Hp != H:
        out = out[:, :H]
    return out.reshape(orig_shape)


def rms_norm_ref(x, weight, eps=1e-6):
    xf = x.astype(jnp.float32)
    ms = jnp.mean(xf * xf, axis=-1, keepdims=True)
    return (xf * jax.lax.rsqrt(ms + eps) * weight.astype(jnp.float32)).astype(x.dtype)


if __name__ == "__main__":
    key = jax.random.PRNGKey(0)
    batch, seq, hidden = 2, 8, 32
    x = jax.random.normal(key, (batch, seq, hidden), dtype=jnp.float32)
    # Deterministic param init mirroring nn.Parameter(torch.ones(ndim)), bias=False.
    weight = jnp.ones((hidden,), dtype=jnp.float32)

    out = jax.block_until_ready(rms_norm(x, weight))
    ref = rms_norm_ref(x, weight)
    assert out.shape == x.shape and out.dtype == x.dtype
    assert jnp.allclose(out, ref, atol=1e-5, rtol=1e-5)

    # Ragged row count (R=15): exercises the masked last block.
    x2 = jax.random.normal(jax.random.PRNGKey(1), (3, 5, hidden), dtype=jnp.float32)
    out2 = jax.block_until_ready(rms_norm(x2, weight))
    assert jnp.allclose(out2, rms_norm_ref(x2, weight), atol=1e-5, rtol=1e-5)

    # bf16 I/O with lane-dense H=128 (no padding path; sublane-16 row tiles).
    xb = jax.random.normal(jax.random.PRNGKey(2), (4, 16, 128), dtype=jnp.bfloat16)
    wb = jnp.ones((128,), dtype=jnp.bfloat16)
    outb = jax.block_until_ready(rms_norm(xb, wb))
    assert outb.dtype == jnp.bfloat16
    assert jnp.allclose(outb.astype(jnp.float32),
                        rms_norm_ref(xb, wb).astype(jnp.float32),
                        atol=2e-2, rtol=2e-2)

    print("KERNEL_OK")
</pallas_src>

<mosaic_0001>
module attributes {stable_mosaic.version = 11 : i64} {
  func.func @_rmsnorm_kernel(%arg0: i32, %arg1: memref<16x128xf32, #tpu.memory_space<vmem>>, %arg2: memref<1x128xf32, #tpu.memory_space<vmem>>, %arg3: memref<16x128xf32, #tpu.memory_space<vmem>>) attributes {dimension_semantics = [#tpu.dimension_semantics<parallel>], iteration_bounds = array<i64: 1>, scalar_prefetch = 0 : i64, scratch_operands = 0 : i64, tpu.core_type = #tpu.core_type<tc>, window_params = [{transform_indices = @transform_0, window_bounds = array<i64: 16, 128>}, {pipeline_mode = #tpu.pipeline_mode<synchronous>, transform_indices = @transform_1, window_bounds = array<i64: 1, 128>}, {transform_indices = @transform_2, window_bounds = array<i64: 16, 128>}]} {
    %c0 = arith.constant 0 : index
    %c0_0 = arith.constant 0 : index
    %0 = vector.load %arg1[%c0, %c0_0] : memref<16x128xf32, #tpu.memory_space<vmem>>, vector<16x128xf32>
    %c0_1 = arith.constant 0 : index
    %c0_2 = arith.constant 0 : index
    %1 = vector.load %arg2[%c0_1, %c0_2] : memref<1x128xf32, #tpu.memory_space<vmem>>, vector<1x128xf32>
    %2 = arith.mulf %0, %0 : vector<16x128xf32>
    %cst = arith.constant dense<0.000000e+00> : vector<16xf32>
    %3 = vector.multi_reduction <add>, %2, %cst [1] : vector<16x128xf32> to vector<16xf32>
    %4 = vector.shape_cast %3 : vector<16xf32> to vector<16x1xf32>
    %cst_3 = arith.constant 3.125000e-02 : f32
    %5 = vector.broadcast %cst_3 : f32 to vector<16x1xf32>
    %6 = arith.mulf %4, %5 : vector<16x1xf32>
    %cst_4 = arith.constant 9.99999997E-7 : f32
    %7 = vector.broadcast %cst_4 : f32 to vector<16x1xf32>
    %8 = arith.addf %6, %7 : vector<16x1xf32>
    %9 = math.rsqrt %8 : vector<16x1xf32>
    %10 = vector.broadcast %9 : vector<16x1xf32> to vector<16x128xf32>
    %11 = arith.mulf %0, %10 : vector<16x128xf32>
    %12 = vector.broadcast %1 : vector<1x128xf32> to vector<16x128xf32>
    %13 = arith.mulf %11, %12 : vector<16x128xf32>
    %c0_5 = arith.constant 0 : index
    %c0_6 = arith.constant 0 : index
    %14 = vector.load %arg3[%c0_5, %c0_6] : memref<16x128xf32, #tpu.memory_space<vmem>>, vector<16x128xf32>
    tpu.vector_store %arg3[%c0_5, %c0_6], %13 {strides = array<i32>} : memref<16x128xf32, #tpu.memory_space<vmem>>, vector<16x128xf32>,
    return
  }
  func.func @transform_0(%arg0: i32) -> (i32, i32) {
    %c0_i32 = arith.constant 0 : i32
    %c0_i32_0 = arith.constant 0 : i32
    return %arg0, %c0_i32 : i32, i32
  }
  func.func @transform_1(%arg0: i32) -> (i32, i32) {
    %c0_i32 = arith.constant 0 : i32
    %c0_i32_0 = arith.constant 0 : i32
    %c0_i32_1 = arith.constant 0 : i32
    return %c0_i32, %c0_i32_0 : i32, i32
  }
  func.func @transform_2(%arg0: i32) -> (i32, i32) {
    %c0_i32 = arith.constant 0 : i32
    %c0_i32_0 = arith.constant 0 : i32
    return %arg0, %c0_i32 : i32, i32
  }
}

module attributes {stable_mosaic.version = 11 : i64} {
  func.func @_rmsnorm_kernel(%arg0: i32, %arg1: memref<16x128xf32, #tpu.memory_space<vmem>>, %arg2: memref<1x128xf32, #tpu.memory_space<vmem>>, %arg3: memref<16x128xf32, #tpu.memory_space<vmem>>) attributes {dimension_semantics = [#tpu.dimension_semantics<parallel>], iteration_bounds = array<i64: 1>, scalar_prefetch = 0 : i64, scratch_operands = 0 : i64, tpu.core_type = #tpu.core_type<tc>, window_params = [{transform_indices = @transform_0, window_bounds = array<i64: 16, 128>}, {pipeline_mode = #tpu.pipeline_mode<synchronous>, transform_indices = @transform_1, window_bounds = array<i64: 1, 128>}, {transform_indices = @transform_2, window_bounds = array<i64: 16, 128>}]} {
    %c0 = arith.constant 0 : index
    %c0_0 = arith.constant 0 : index
    %0 = vector.load %arg1[%c0, %c0_0] : memref<16x128xf32, #tpu.memory_space<vmem>>, vector<16x128xf32>
    %c0_1 = arith.constant 0 : index
    %c0_2 = arith.constant 0 : index
    %1 = vector.load %arg2[%c0_1, %c0_2] : memref<1x128xf32, #tpu.memory_space<vmem>>, vector<1x128xf32>
    %2 = arith.mulf %0, %0 : vector<16x128xf32>
    %cst = arith.constant dense<0.000000e+00> : vector<16xf32>
    %3 = vector.multi_reduction <add>, %2, %cst [1] : vector<16x128xf32> to vector<16xf32>
    %4 = vector.shape_cast %3 : vector<16xf32> to vector<16x1xf32>
    %cst_3 = arith.constant 3.125000e-02 : f32
    %5 = vector.broadcast %cst_3 : f32 to vector<16x1xf32>
    %6 = arith.mulf %4, %5 : vector<16x1xf32>
    %cst_4 = arith.constant 9.99999997E-7 : f32
    %7 = vector.broadcast %cst_4 : f32 to vector<16x1xf32>
    %8 = arith.addf %6, %7 : vector<16x1xf32>
    %9 = math.rsqrt %8 : vector<16x1xf32>
    %10 = vector.broadcast %9 : vector<16x1xf32> to vector<16x128xf32>
    %11 = arith.mulf %0, %10 : vector<16x128xf32>
    %12 = vector.broadcast %1 : vector<1x128xf32> to vector<16x128xf32>
    %13 = arith.mulf %11, %12 : vector<16x128xf32>
    %c0_5 = arith.constant 0 : index
    %c0_6 = arith.constant 0 : index
    %14 = vector.load %arg3[%c0_5, %c0_6] : memref<16x128xf32, #tpu.memory_space<vmem>>, vector<16x128xf32>
    tpu.vector_store %arg3[%c0_5, %c0_6], %13 {strides = array<i32>} : memref<16x128xf32, #tpu.memory_space<vmem>>, vector<16x128xf32>,
    return
  }
  func.func @transform_0(%arg0: i32) -> (i32, i32) {
    %c0_i32 = arith.constant 0 : i32
    %c0_i32_0 = arith.constant 0 : i32
    return %arg0, %c0_i32 : i32, i32
  }
  func.func @transform_1(%arg0: i32) -> (i32, i32) {
    %c0_i32 = arith.constant 0 : i32
    %c0_i32_0 = arith.constant 0 : i32
    %c0_i32_1 = arith.constant 0 : i32
    return %c0_i32, %c0_i32_0 : i32, i32
  }
  func.func @transform_2(%arg0: i32) -> (i32, i32) {
    %c0_i32 = arith.constant 0 : i32
    %c0_i32_0 = arith.constant 0 : i32
    return %arg0, %c0_i32 : i32, i32
  }
}

</mosaic_0001>

<bundles_post_ra>
// kernel: tpu_custom_call.1
= control target key start
LH: loop header
LB: loop body
LE: loop exit
PB: predicated region body
PF: predicated region fallthrough
CT: control target
= control target key end

     0   :  { %7 = vsyncpa [#allocation3], 0  ;;  %s157_s0 = inlined_call_operand.hbm [shape: f32[16,128], index: 0, kind: input, shape index: {}]   ;;  %s158_s1 = inlined_call_operand.vmem [shape: f32[1,128], index: 1, kind: input, shape index: {}]   ;;  %s159_s2 = inlined_call_operand.hbm [shape: f32[16,128], index: 2, kind: output, shape index: {}]  }
   0x1   :  { %8 = vsyncpa [#allocation4], 0  ;;  %s123_s9 = smov [#allocation2]  }
   0x2   :  { %s14_s10 = sshll.u32 %s123_s9, 4  ;;  %s15_s10 = int_to_ptr.vmem [resolvable:$true] %s14_s10 }
   0x3   :  { %s87_s11 = scalar_lea.vmem %s15_s10, 256  ;;  %p92_p1 = scmp.lt.s32.totalorder %s15_s10, %s15_s10 }
   0x4   :  { %p88_p0 = scmp.ne.s32.totalorder %s15_s10, %s87_s11  ;;  %p93_p2 = scmp.lt.s32.totalorder %s87_s11, %s87_s11 }
   0x6   :  { %p94_p3 = por %p93_p2, %p92_p1 }
   0x8   :  { %p95_p4 = pnand %p94_p3, %p88_p0 }
   0xa   :  { %98 = shalt.err (!%p95_p4)
}
   0xb   :  { %s124_s12 = smov 128   ;;  %s125_s13 = smov 8  }
   0xc   :  { %20 = dma.hbm_to_vmem [thread:$0]  %s157_s0, 256, %s15_s10, [#allocation3], %s124_s12, %s124_s12, %s125_s13  }
   0xd   :  { %119 = dma.done.wait [#allocation3], 256  }
   0xe   :  { %120 = vsyncadd [#allocation3], 4294967040  ;;  %v26_v0 = vld [vmem:[#allocation2] sm:$0xff]  ;;  %v27_v1 = vld [vmem:[#allocation2 + $0x8] sm:$0xff]  ;;  %s126_s0 = smov [#allocation5]  }
   0xf   :  { %v29_v2 = vmul.f32 %v26_v0, %v26_v0  ;;  %v30_v3 = vmul.f32 %v27_v1, %v27_v1  ;;  %v70_v11 = vld [vmem:[%s158_s1] ss:$0 sm:$0xff]  ;;  %s58_s18 = sshll.u32 %s126_s0, 4  ;;  %s59_s18 = int_to_ptr.vmem [resolvable:$true] %s58_s18 }
  0x10   :  { %s99_s19 = scalar_lea.vmem %s59_s18, 256  ;;  %p104_p6 = scmp.lt.s32.totalorder %s59_s18, %s59_s18 }
  0x11   :  { %31 = vadd.xlane.f32.xlu0 %v29_v2  ;;  %p100_p5 = scmp.ne.s32.totalorder %s59_s18, %s99_s19  ;;  %p105_p7 = scmp.lt.s32.totalorder %s99_s19, %s99_s19 }
  0x13   :  { %p106_p8 = por %p105_p7, %p104_p6 }
  0x15   :  { %33 = vadd.xlane.f32.xlu0 %v30_v3  ;;  %p107_p9 = pnand %p106_p8, %p100_p5 }
  0x9a   :  { %v32_v4 = vpop.xlane.xlu0 %31 }
  0x9b   :  { %v35_v5 = vmul.f32 0.03125, %v32_v4 }
  0x9d   :  { %v37_v6 = vadd.f32 1e-06, %v35_v5 }
  0x9e   :  { %v34_v7 = vpop.xlane.xlu0 %33 }
  0x9f   :  { %75 = vrsqrt.f32 %v37_v6  ;;  %v36_v8 = vmul.f32 0.03125, %v34_v7 }
  0xa1   :  { %v38_v9 = vadd.f32 1e-06, %v36_v8 }
  0xa3   :  { %77 = vrsqrt.f32 %v38_v9 }
  0xac   :  { %v76_v10 = vpop.eup %75 }
  0xad   :  { %v41_v12 = vmul.f32 %v76_v10, %v26_v0 }
  0xaf   :  { %v49_v13 = vmul.f32 %v70_v11, %v41_v12 }
  0xb0   :  { %v78_v14 = vpop.eup %77 }
  0xb1   :  { %v42_v15 = vmul.f32 %v78_v14, %v27_v1  ;;  %51 = vst [vmem:[#allocation5] sm:$0xff] %v49_v13 }
  0xb3   :  { %v50_v16 = vmul.f32 %v70_v11, %v42_v15 }
  0xb5   :  { %52 = vst [vmem:[#allocation5 + $0x8] sm:$0xff] %v50_v16 }
  0xb6   :  { %110 = shalt.err (!%p107_p9)
}
  0xb7   :  { %64 = dma.vmem_to_hbm [thread:$0]  %s59_s18, 256, %s159_s2, [#allocation4], %s124_s12, %s124_s12, %s125_s13  }
  0xb8   :  { %121 = dma.done.wait [#allocation4], 256  }
  0xb9   :  { %122 = vsyncadd [#allocation4], 4294967040 }
  0xba   :  { %68 = vsyncpa [#allocation3], 1 }
  0xbb   :  { %69 = vsyncpa [#allocation4], 1 }

// kernel: tpu_custom_call.1
= control target key start
LH: loop header
LB: loop body
LE: loop exit
PB: predicated region body
PF: predicated region fallthrough
CT: control target
= control target key end

     0   :  { %7 = vsyncpa [#allocation3], 0  ;;  %s157_s0 = inlined_call_operand.hbm [shape: f32[16,128], index: 0, kind: input, shape index: {}]   ;;  %s158_s1 = inlined_call_operand.vmem [shape: f32[1,128], index: 1, kind: input, shape index: {}]   ;;  %s159_s2 = inlined_call_operand.hbm [shape: f32[16,128], index: 2, kind: output, shape index: {}]  }
   0x1   :  { %8 = vsyncpa [#allocation4], 0  ;;  %s123_s9 = smov [#allocation2]  }
   0x2   :  { %s14_s10 = sshll.u32 %s123_s9, 4  ;;  %s15_s10 = int_to_ptr.vmem [resolvable:$true] %s14_s10 }
   0x3   :  { %s87_s11 = scalar_lea.vmem %s15_s10, 256  ;;  %p92_p1 = scmp.lt.s32.totalorder %s15_s10, %s15_s10 }
   0x4   :  { %p88_p0 = scmp.ne.s32.totalorder %s15_s10, %s87_s11  ;;  %p93_p2 = scmp.lt.s32.totalorder %s87_s11, %s87_s11 }
   0x6   :  { %p94_p3 = por %p93_p2, %p92_p1 }
   0x8   :  { %p95_p4 = pnand %p94_p3, %p88_p0 }
   0xa   :  { %98 = shalt.err (!%p95_p4)
}
   0xb   :  { %s124_s12 = smov 128   ;;  %s125_s13 = smov 8  }
   0xc   :  { %20 = dma.hbm_to_vmem [thread:$0]  %s157_s0, 256, %s15_s10, [#allocation3], %s124_s12, %s124_s12, %s125_s13  }
   0xd   :  { %119 = dma.done.wait [#allocation3], 256  }
   0xe   :  { %120 = vsyncadd [#allocation3], 4294967040  ;;  %v26_v0 = vld [vmem:[#allocation2] sm:$0xff]  ;;  %v27_v1 = vld [vmem:[#allocation2 + $0x8] sm:$0xff]  ;;  %s126_s0 = smov [#allocation5]  }
   0xf   :  { %v29_v2 = vmul.f32 %v26_v0, %v26_v0  ;;  %v30_v3 = vmul.f32 %v27_v1, %v27_v1  ;;  %v70_v11 = vld [vmem:[%s158_s1] ss:$0 sm:$0xff]  ;;  %s58_s18 = sshll.u32 %s126_s0, 4  ;;  %s59_s18 = int_to_ptr.vmem [resolvable:$true] %s58_s18 }
  0x10   :  { %s99_s19 = scalar_lea.vmem %s59_s18, 256  ;;  %p104_p6 = scmp.lt.s32.totalorder %s59_s18, %s59_s18 }
  0x11   :  { %31 = vadd.xlane.f32.xlu0 %v29_v2  ;;  %p100_p5 = scmp.ne.s32.totalorder %s59_s18, %s99_s19  ;;  %p105_p7 = scmp.lt.s32.totalorder %s99_s19, %s99_s19 }
  0x13   :  { %p106_p8 = por %p105_p7, %p104_p6 }
  0x15   :  { %33 = vadd.xlane.f32.xlu0 %v30_v3  ;;  %p107_p9 = pnand %p106_p8, %p100_p5 }
  0x9a   :  { %v32_v4 = vpop.xlane.xlu0 %31 }
  0x9b   :  { %v35_v5 = vmul.f32 0.03125, %v32_v4 }
  0x9d   :  { %v37_v6 = vadd.f32 1e-06, %v35_v5 }
  0x9e   :  { %v34_v7 = vpop.xlane.xlu0 %33 }
  0x9f   :  { %75 = vrsqrt.f32 %v37_v6  ;;  %v36_v8 = vmul.f32 0.03125, %v34_v7 }
  0xa1   :  { %v38_v9 = vadd.f32 1e-06, %v36_v8 }
  0xa3   :  { %77 = vrsqrt.f32 %v38_v9 }
  0xac   :  { %v76_v10 = vpop.eup %75 }
  0xad   :  { %v41_v12 = vmul.f32 %v76_v10, %v26_v0 }
  0xaf   :  { %v49_v13 = vmul.f32 %v70_v11, %v41_v12 }
  0xb0   :  { %v78_v14 = vpop.eup %77 }
  0xb1   :  { %v42_v15 = vmul.f32 %v78_v14, %v27_v1  ;;  %51 = vst [vmem:[#allocation5] sm:$0xff] %v49_v13 }
  0xb3   :  { %v50_v16 = vmul.f32 %v70_v11, %v42_v15 }
  0xb5   :  { %52 = vst [vmem:[#allocation5 + $0x8] sm:$0xff] %v50_v16 }
  0xb6   :  { %110 = shalt.err (!%p107_p9)
}
  0xb7   :  { %64 = dma.vmem_to_hbm [thread:$0]  %s59_s18, 256, %s159_s2, [#allocation4], %s124_s12, %s124_s12, %s125_s13  }
  0xb8   :  { %121 = dma.done.wait [#allocation4], 256  }
  0xb9   :  { %122 = vsyncadd [#allocation4], 4294967040 }
  0xba   :  { %68 = vsyncpa [#allocation3], 1 }
  0xbb   :  { %69 = vsyncpa [#allocation4], 1 }

</bundles_post_ra>
